<compile_context>
chip_gen: v7x
topology: tpu7x:2x2x1
jax: 0.10.0
libtpu: 0.0.40
codegen_flags: <defaults>
</compile_context>

<pallas_src>
import jax
import jax.numpy as jnp
from jax.experimental import pallas as pl
from jax.experimental.pallas import tpu as pltpu

_DEFAULT_TM = 1024  # target rows per grid step


def _round_up(v, m):
    return (v + m - 1) // m * m


def _sine_layer_kernel(x_ref, wt_ref, b_ref, o_ref):
    # x_ref: (TM, K)   wt_ref: (K, TN)   b_ref: (1, TN)   o_ref: (TM, TN)
    z = jnp.dot(x_ref[...], wt_ref[...], preferred_element_type=jnp.float32)
    z = z + b_ref[...].astype(jnp.float32)          # bias add + sin in f32
    o_ref[...] = jnp.sin(z).astype(o_ref.dtype)     # cast only at the store


def _vmem_budget_bytes():
    """~85% of physical per-core VMEM (v5e/v6e: 128 MiB, v7x: 64 MiB)."""
    try:
        cap = int(pltpu.get_tpu_info().vmem_capacity_bytes)
    except Exception:
        cap = 64 << 20  # conservative fallback (v7x per-TC size)
    return int(0.85 * cap)


def _plan_tiles(n_rows, in_f, out_f, itemsize, budget, resident_bufs):
    """Pick (TM, TN): shrink TM first, then tile the out dim (TN, x128)."""
    sub = 8 if itemsize >= 4 else 16              # bf16 packs 2 rows / sublane
    tm = min(_DEFAULT_TM, _round_up(n_rows, sub))
    # >= 2 row grid steps when possible so both v7x TensorCores get work.
    if pl.cdiv(n_rows, tm) < 2 and n_rows > sub:
        tm = _round_up(pl.cdiv(n_rows, 2), sub)
    tn = out_f

    def vmem_use(tm_, tn_):
        # resident W/b (+ double-buffered x and y tiles) + f32 matmul result.
        return (itemsize * (resident_bufs * (in_f * tn_ + tn_)
                            + 2 * tm_ * in_f + 2 * tm_ * tn_)
                + 4 * tm_ * tn_)

    min_tm = sub if n_rows < 256 else 256
    while vmem_use(tm, tn) > budget:
        if tm > min_tm:
            tm = max(min_tm, _round_up(tm // 2, sub))
        elif tn > 128:
            tn = max(128, ((tn // 2) // 128) * 128)   # keep TN a x128 multiple
        else:
            break
    return tm, tn


def _sine_layer_call(x2, wt, b2, *, tm, tn, vmem_limit, single_buffer_resident):
    n_rows, in_f = x2.shape
    _, out_f = wt.shape
    dtype = wt.dtype
    itemsize = jnp.dtype(dtype).itemsize
    grid = (pl.cdiv(out_f, tn), pl.cdiv(n_rows, tm))  # (col blocks, row blocks)

    if single_buffer_resident:
        # Resident weight/bias: single buffer halves their VMEM footprint.
        w_spec = pl.BlockSpec((in_f, tn), lambda j, i: (0, j),
                              pipeline_mode=pl.Buffered(1))
        b_spec = pl.BlockSpec((1, tn), lambda j, i: (0, j),
                              pipeline_mode=pl.Buffered(1))
    else:
        w_spec = pl.BlockSpec((in_f, tn), lambda j, i: (0, j))
        b_spec = pl.BlockSpec((1, tn), lambda j, i: (0, j))

    cost = pl.CostEstimate(
        flops=2 * n_rows * in_f * out_f,
        transcendentals=n_rows * out_f,
        bytes_accessed=itemsize * (n_rows * in_f + in_f * out_f
                                   + out_f + n_rows * out_f),
    )

    return pl.pallas_call(
        _sine_layer_kernel,
        out_shape=jax.ShapeDtypeStruct((n_rows, out_f), dtype),
        grid_spec=pltpu.PrefetchScalarGridSpec(
            num_scalar_prefetch=0,
            grid=grid,
            in_specs=[
                pl.BlockSpec((tm, in_f), lambda j, i: (i, 0)),  # streamed rows
                w_spec,                                         # resident W
                b_spec,                                         # resident bias
            ],
            out_specs=pl.BlockSpec((tm, tn), lambda j, i: (i, j)),
        ),
        compiler_params=pltpu.CompilerParams(
            dimension_semantics=("parallel", "parallel"),
            vmem_limit_bytes=int(vmem_limit),
        ),
        cost_estimate=cost,
    )(x2, wt, b2)


def prepare_sine_layer_params(weight, bias, w0=30.0, dtype=jnp.float32):
    """One-time prep: transpose, fold w0, cast to the storage dtype.

    weight: (out_features, in_features); bias: (out_features,) or None.
    Returns (wt, b2) of shapes (in_features, out_features) and (1, out_features).
    """
    out_f, in_f = weight.shape
    wt = (w0 * weight.astype(jnp.float32).T).astype(dtype)      # (in_f, out_f)
    b = jnp.zeros((out_f,), jnp.float32) if bias is None else bias.astype(jnp.float32)
    b2 = (w0 * b).astype(dtype).reshape(1, out_f)
    return wt, b2


def sine_layer_apply(x, wt, b2):
    """x: (..., in_features); wt/b2 from prepare_sine_layer_params."""
    *lead, in_f = x.shape
    in_w, out_f = wt.shape
    assert in_w == in_f, (in_w, in_f)
    dtype = wt.dtype
    itemsize = jnp.dtype(dtype).itemsize

    n = 1
    for d in lead:
        n *= d
    x2 = x.reshape(n, in_f).astype(dtype)   # no HBM-side padding copies

    budget = _vmem_budget_bytes()
    try:
        tm, tn = _plan_tiles(n, in_f, out_f, itemsize, budget, resident_bufs=1)
        out = _sine_layer_call(x2, wt, b2, tm=tm, tn=tn, vmem_limit=budget,
                               single_buffer_resident=True)
    except Exception:
        # Fallback if pipeline_mode=pl.Buffered(1) is unsupported: default
        # (double-buffered) resident weight/bias, re-planned accordingly.
        tm, tn = _plan_tiles(n, in_f, out_f, itemsize, budget, resident_bufs=2)
        out = _sine_layer_call(x2, wt, b2, tm=tm, tn=tn, vmem_limit=budget,
                               single_buffer_resident=False)

    return out.reshape(*lead, out_f)


def sine_layer(x, weight, bias, w0=30.0, dtype=None):
    """SineLayer.forward: sin(w0 * (x @ W.T + b)).

    `dtype` selects the storage dtype for x/W/y in the kernel (jnp.bfloat16
    halves HBM traffic; math stays f32). Defaults to x.dtype (exact semantics).
    """
    dtype = x.dtype if dtype is None else dtype
    wt, b2 = prepare_sine_layer_params(weight, bias, w0=w0, dtype=dtype)
    return sine_layer_apply(x, wt, b2)


def init_sine_layer_params(key, in_features, out_features, *, w0=30.0,
                           is_first=False, use_pe=True, bias=True):
    """Matches SineLayer.init_weights + nn.Linear default bias init."""
    kw, kb = jax.random.split(key)
    if is_first and (not use_pe):
        bound_w = 1.0 / in_features
    else:
        bound_w = float(jnp.sqrt(6.0 / in_features)) / w0
    weight = jax.random.uniform(kw, (out_features, in_features),
                                minval=-bound_w, maxval=bound_w,
                                dtype=jnp.float32)
    if bias:
        bound_b = 1.0 / float(jnp.sqrt(float(in_features)))
        b = jax.random.uniform(kb, (out_features,),
                               minval=-bound_b, maxval=bound_b,
                               dtype=jnp.float32)
    else:
        b = None
    return weight, b


if __name__ == "__main__":
    key = jax.random.PRNGKey(0)
    k_x, k_p = jax.random.split(key)

    batch, seq = 2, 8
    in_features, out_features = 32, 32
    w0 = 30.0

    x = jax.random.normal(k_x, (batch, seq, in_features), dtype=jnp.float32)
    weight, bias = init_sine_layer_params(
        k_p, in_features, out_features, w0=w0, is_first=False, use_pe=True, bias=True
    )

    # Pure-JAX reference.
    y_ref = jnp.sin(w0 * (x @ weight.T + bias))

    # f32 path (exact module semantics, tight check).
    y32 = sine_layer(x, weight, bias, w0=w0, dtype=jnp.float32)
    jax.block_until_ready(y32)
    assert y32.shape == (batch, seq, out_features)
    assert jnp.allclose(y32, y_ref, atol=1e-4, rtol=1e-4), \
        float(jnp.max(jnp.abs(y32 - y_ref)))

    # bf16 storage path (halved HBM traffic; math still f32) — looser check.
    ybf = sine_layer(x, weight, bias, w0=w0, dtype=jnp.bfloat16)
    jax.block_until_ready(ybf)
    assert ybf.shape == (batch, seq, out_features)
    err_bf = float(jnp.max(jnp.abs(ybf.astype(jnp.float32) - y_ref)))
    assert err_bf < 0.08, err_bf

    print("KERNEL_OK")
</pallas_src>

<mosaic_0001>
module attributes {stable_mosaic.version = 11 : i64} {
  func.func @_sine_layer_kernel(%arg0: i32, %arg1: i32, %arg2: memref<8x32xf32, #tpu.memory_space<vmem>>, %arg3: memref<32x32xf32, #tpu.memory_space<vmem>>, %arg4: memref<1x32xf32, #tpu.memory_space<vmem>>, %arg5: memref<8x32xf32, #tpu.memory_space<vmem>>) attributes {dimension_semantics = [#tpu.dimension_semantics<parallel>, #tpu.dimension_semantics<parallel>], iteration_bounds = array<i64: 1, 2>, scalar_prefetch = 0 : i64, scratch_operands = 0 : i64, tpu.core_type = #tpu.core_type<tc>, window_params = [{transform_indices = @transform_0, window_bounds = array<i64: 8, 32>}, {pipeline_mode = #tpu.pipeline_mode<synchronous>, transform_indices = @transform_1, window_bounds = array<i64: 32, 32>}, {pipeline_mode = #tpu.pipeline_mode<synchronous>, transform_indices = @transform_2, window_bounds = array<i64: 1, 32>}, {transform_indices = @transform_3, window_bounds = array<i64: 8, 32>}]} {
    %c0 = arith.constant 0 : index
    %c0_0 = arith.constant 0 : index
    %0 = vector.load %arg2[%c0, %c0_0] : memref<8x32xf32, #tpu.memory_space<vmem>>, vector<8x32xf32>
    %c0_1 = arith.constant 0 : index
    %c0_2 = arith.constant 0 : index
    %1 = vector.load %arg3[%c0_1, %c0_2] : memref<32x32xf32, #tpu.memory_space<vmem>>, vector<32x32xf32>
    %cst = arith.constant dense<0.000000e+00> : vector<8x32xf32>
    %2 = tpu.matmul %0, %1, %cst {dimension_numbers = #tpu.dot_dimension_numbers<[1], [0], [0], [1], [0, 0, 1, 1], [], []>} : vector<8x32xf32>, vector<32x32xf32>, vector<8x32xf32> -> vector<8x32xf32>
    %c0_3 = arith.constant 0 : index
    %c0_4 = arith.constant 0 : index
    %3 = vector.load %arg4[%c0_3, %c0_4] : memref<1x32xf32, #tpu.memory_space<vmem>>, vector<1x32xf32>
    %4 = vector.broadcast %3 : vector<1x32xf32> to vector<8x32xf32>
    %5 = arith.addf %2, %4 : vector<8x32xf32>
    %6 = math.sin %5 : vector<8x32xf32>
    %c0_5 = arith.constant 0 : index
    %c0_6 = arith.constant 0 : index
    %7 = vector.load %arg5[%c0_5, %c0_6] : memref<8x32xf32, #tpu.memory_space<vmem>>, vector<8x32xf32>
    tpu.vector_store %arg5[%c0_5, %c0_6], %6 {strides = array<i32>} : memref<8x32xf32, #tpu.memory_space<vmem>>, vector<8x32xf32>,
    return
  }
  func.func @transform_0(%arg0: i32, %arg1: i32) -> (i32, i32) {
    %c0_i32 = arith.constant 0 : i32
    %c0_i32_0 = arith.constant 0 : i32
    return %arg1, %c0_i32 : i32, i32
  }
  func.func @transform_1(%arg0: i32, %arg1: i32) -> (i32, i32) {
    %c0_i32 = arith.constant 0 : i32
    %c0_i32_0 = arith.constant 0 : i32
    return %c0_i32, %arg0 : i32, i32
  }
  func.func @transform_2(%arg0: i32, %arg1: i32) -> (i32, i32) {
    %c0_i32 = arith.constant 0 : i32
    %c0_i32_0 = arith.constant 0 : i32
    return %c0_i32, %arg0 : i32, i32
  }
  func.func @transform_3(%arg0: i32, %arg1: i32) -> (i32, i32) {
    %c0_i32 = arith.constant 0 : i32
    return %arg1, %arg0 : i32, i32
  }
}

module attributes {stable_mosaic.version = 11 : i64} {
  func.func @_sine_layer_kernel(%arg0: i32, %arg1: i32, %arg2: memref<8x32xf32, #tpu.memory_space<vmem>>, %arg3: memref<32x32xf32, #tpu.memory_space<vmem>>, %arg4: memref<1x32xf32, #tpu.memory_space<vmem>>, %arg5: memref<8x32xf32, #tpu.memory_space<vmem>>) attributes {dimension_semantics = [#tpu.dimension_semantics<parallel>, #tpu.dimension_semantics<parallel>], iteration_bounds = array<i64: 1, 2>, scalar_prefetch = 0 : i64, scratch_operands = 0 : i64, tpu.core_type = #tpu.core_type<tc>, window_params = [{transform_indices = @transform_0, window_bounds = array<i64: 8, 32>}, {transform_indices = @transform_1, window_bounds = array<i64: 32, 32>}, {transform_indices = @transform_2, window_bounds = array<i64: 1, 32>}, {transform_indices = @transform_3, window_bounds = array<i64: 8, 32>}]} {
    %c0 = arith.constant 0 : index
    %c0_0 = arith.constant 0 : index
    %0 = vector.load %arg2[%c0, %c0_0] : memref<8x32xf32, #tpu.memory_space<vmem>>, vector<8x32xf32>
    %c0_1 = arith.constant 0 : index
    %c0_2 = arith.constant 0 : index
    %1 = vector.load %arg3[%c0_1, %c0_2] : memref<32x32xf32, #tpu.memory_space<vmem>>, vector<32x32xf32>
    %cst = arith.constant dense<0.000000e+00> : vector<8x32xf32>
    %2 = tpu.matmul %0, %1, %cst {dimension_numbers = #tpu.dot_dimension_numbers<[1], [0], [0], [1], [0, 0, 1, 1], [], []>} : vector<8x32xf32>, vector<32x32xf32>, vector<8x32xf32> -> vector<8x32xf32>
    %c0_3 = arith.constant 0 : index
    %c0_4 = arith.constant 0 : index
    %3 = vector.load %arg4[%c0_3, %c0_4] : memref<1x32xf32, #tpu.memory_space<vmem>>, vector<1x32xf32>
    %4 = vector.broadcast %3 : vector<1x32xf32> to vector<8x32xf32>
    %5 = arith.addf %2, %4 : vector<8x32xf32>
    %6 = math.sin %5 : vector<8x32xf32>
    %c0_5 = arith.constant 0 : index
    %c0_6 = arith.constant 0 : index
    %7 = vector.load %arg5[%c0_5, %c0_6] : memref<8x32xf32, #tpu.memory_space<vmem>>, vector<8x32xf32>
    tpu.vector_store %arg5[%c0_5, %c0_6], %6 {strides = array<i32>} : memref<8x32xf32, #tpu.memory_space<vmem>>, vector<8x32xf32>,
    return
  }
  func.func @transform_0(%arg0: i32, %arg1: i32) -> (i32, i32) {
    %c0_i32 = arith.constant 0 : i32
    %c0_i32_0 = arith.constant 0 : i32
    return %arg1, %c0_i32 : i32, i32
  }
  func.func @transform_1(%arg0: i32, %arg1: i32) -> (i32, i32) {
    %c0_i32 = arith.constant 0 : i32
    %c0_i32_0 = arith.constant 0 : i32
    return %c0_i32, %arg0 : i32, i32
  }
  func.func @transform_2(%arg0: i32, %arg1: i32) -> (i32, i32) {
    %c0_i32 = arith.constant 0 : i32
    %c0_i32_0 = arith.constant 0 : i32
    return %c0_i32, %arg0 : i32, i32
  }
  func.func @transform_3(%arg0: i32, %arg1: i32) -> (i32, i32) {
    %c0_i32 = arith.constant 0 : i32
    return %arg1, %arg0 : i32, i32
  }
}

</mosaic_0001>

<bundles_post_ra>
// kernel: tpu_custom_call.1
= control target key start
LH: loop header
LB: loop body
LE: loop exit
PB: predicated region body
PF: predicated region fallthrough
CT: control target
= control target key end

     0   :  { %8 = vsyncpa [#allocation3], 0  ;;  %s1105_s0 = inlined_call_operand.hbm [shape: f32[16,32], index: 0, kind: input, shape index: {}]   ;;  %s1106_s1 = inlined_call_operand.hbm [shape: f32[32,32], index: 1, kind: input, shape index: {}]   ;;  %s1107_s2 = inlined_call_operand.vmem [shape: f32[1,32], index: 2, kind: input, shape index: {}]   ;;  %s1108_s3 = inlined_call_operand.hbm [shape: f32[16,32], index: 3, kind: output, shape index: {}]  }
   0x1   :  { %10 = vsyncpa [#allocation3 + $0x1], 0 }
   0x2   :  { %11 = vsyncpa [#allocation6], 0 }
   0x3   :  { %12 = vsyncpa [#allocation4], 0 }
   0x4   :  { %14 = vsyncpa [#allocation4 + $0x1], 0  ;;  %s861_s12 = smov 0   ;;  %s863_s13 = smov 0  }
   0x5   :  { %s865_s14 = smov 0   ;;  %s867_s15 = smov 0  }
   0x6   :  { %s869_s16 = smov 0   ;;  %s871_s17 = smov 0  }
   0x7 LB: > { %s545_s18 = sadd.s32 4294967295, %s825_s17   ;;  %s546_s19 = sadd.s32 4294967294, %s825_s17   ;;  %s825_s17 = sphi %s871_s17, %s20_s17   ;;  %s821_s16 = sphi %s869_s16, %s1132_s16   ;;  %s817_s15 = sphi %s867_s15, %s1131_s15   ;;  %s813_s14 = sphi %s865_s14, %s1130_s14   ;;  %s809_s13 = sphi %s863_s13, %s1129_s13   ;;  %s805_s12 = sphi %s861_s12, %s1128_s12  }
   0x8   : > { %p52_p0 = scmp.ne.s32.totalorder %s809_s13, %s805_s12  ;;  %p895_p1 = scmp.eq.s32.totalorder %s545_s18, 0 }
   0x9   : > { %p899_p2 = scmp.eq.s32.totalorder %s545_s18, 1  ;;  %p136_p3 = scmp.eq.s32.totalorder %s546_s19, 1 }
   0xa   : > { %s1113_s20 = scalar_select %p895_p1, 1, 0 }
   0xb   : > { %s1114_s21 = scalar_select %p899_p2, 1, 0 }
   0xc   : > { %p905_p4 = por %p895_p1, %p52_p0  ;;  %p547_p5 = scmp.ge.s32.totalorder %s825_s17, 1 }
   0xd   : > { %p910_p6 = por %p136_p3, %p52_p0  ;;  %p143_p7 = scmp.lt.s32.totalorder %s825_s17, 3 }
   0xe   : > { %s1115_s22 = scalar_select %p905_p4, 1, 0 }
   0xf   : > { %s1116_s23 = scalar_select %p910_p6, 1, 0 }
  0x10   : > { %p915_p8 = pnand %p547_p5, %p143_p7  ;;  %s827_s25 = smov [#allocation5]  }
  0x11   : > { %s157_s26 = sshll.u32 %s827_s25, 4  ;;  %s29_s28 = sadd.s32 1, %s821_s16  ;;  %s158_s26 = int_to_ptr.vmem [resolvable:$true] %s157_s26 }
  0x12   : > { %s1117_s24 = scalar_select %p915_p8, 1, 0 }
  0x13   : > { %p601_p9 = pneg %p915_p8  ;;  %s681_s4 = scalar_lea.hbm %s1106_s1, 512 }
  0x14   : > { %p682_p12 = scmp.ne.s32.totalorder %s1106_s1, %s681_s4  ;;  %p688_p5 = scmp.lt.u32.totalorder %s681_s4, %s1106_s1 }
  0x15   : > { %p924_p11 = pnand %p601_p9, %p895_p1 }
  0x17   : > { %p683_p13 = pneg %p924_p11 }
  0x19   : > { %p684_p0 = pnand %p683_p13, %p682_p12 }
  0x1b   : > { %p685_p3 = pneg %p684_p0 }
  0x1d   : > { %p690_p7 = pnand %p688_p5, %p685_p3 }
  0x1f   : > { %693 = shalt.err (!%p690_p7)
}
  0x20   : > { %s694_s9 = scalar_lea.vmem %s158_s26, 512  ;;  %p702_p1 = scmp.lt.s32.totalorder %s158_s26, %s158_s26 }
  0x21   : > { %p695_p9 = scmp.ne.s32.totalorder %s158_s26, %s694_s9  ;;  %p703_p4 = scmp.lt.s32.totalorder %s694_s9, %s694_s9 }
  0x23   : > { %p697_p10 = pnand %p695_p9, %p683_p13  ;;  %p704_p8 = por %p703_p4, %p702_p1 }
  0x25   : > { %p698_p6 = pneg %p697_p10 }
  0x27   : > { %p705_p2 = pnand %p704_p8, %p698_p6 }
  0x29   : > { %708 = shalt.err (!%p705_p2)
}
  0x2a   : > { %s828_s10 = smov 128   ;;  %s829_s11 = smov 8  }
  0x2b   : > { %604 = dma.hbm_to_vmem [thread:$0]  (!%p924_p11), %s1106_s1, 512, %s158_s26, [#allocation6], %s828_s10, %s828_s10, %s829_s11  }
  0x2c   : > { %p30_p1 = scmp.ge.s32.totalorder %s29_s28, 2  ;;  %s39_s25 = sadd.s32 1, %s813_s14 }
  0x2d   : > { %p46_p2 = scmp.ne.s32.totalorder %s813_s14, %s809_s13  ;;  %p47_p4 = scmp.eq.s32.totalorder %s825_s17, 0 }
  0x2e   : > { %s1134_s28 = smov (%p30_p1, %s29_s28), 0  ;;  %p1120_p8 = scmp.ne.s32.totalorder %s1114_s21, 0 }
  0x2f   : > { %p951_p6 = por %p47_p4, %p46_p2  ;;  %s36_s27 = ssub.s32 %s821_s16, %s1134_s28 }
  0x30   : > { %p957_p10 = por %p1120_p8, %p46_p2  ;;  %p614_p12 = scmp.lt.s32.totalorder %s825_s17, 2 }
  0x31   : > { %p37_p11 = scmp.eq.s32.totalorder %s36_s27, 0  ;;  %s177_s26 = sand.u32 1, %s813_s14  }
  0x32   : > { %s551_s4 = sshll.u32 %s177_s26, 3  ;;  %s552_s6 = sshll.u32 %s821_s16, 7 }
  0x33   : > { %s966_s5 = scalar_select %p37_p11, %s813_s14, %s39_s25  }
  0x34   : > { %s972_s9 = scalar_lea.hbm %s1105_s0, %s552_s6  ;;  %s181_s21 = scalar_lea.vmem [#allocation2], %s551_s4 }
  0x35   : > { %s188_s10 = sshll.u32 %s181_s21, 4  ;;  %p978_p13 = pnand %p614_p12, %p951_p6  ;;  %s974_s10 = int_to_ptr.vmem [resolvable:$true] %s188_s10 }
  0x36   : > { %s178_s18 = scalar_lea.sflag [#allocation3], %s177_s26  ;;  %s709_s19 = scalar_lea.hbm %s972_s9, 128 }
  0x37   : > { %p710_p0 = scmp.ne.s32.totalorder %s972_s9, %s709_s19  ;;  %p711_p3 = pneg %p978_p13 }
  0x38   : > { %s714_s4 = scalar_lea.hbm %s1105_s0, 256  ;;  %p715_p9 = scmp.lt.u32.totalorder %s972_s9, %s1105_s0 }
  0x39   : > { %p712_p5 = pnand %p711_p3, %p710_p0  ;;  %p716_p1 = scmp.lt.u32.totalorder %s714_s4, %s709_s19 }
  0x3a   : > { %p718_p4 = scmp.lt.u32.totalorder %s709_s19, %s972_s9 }
  0x3b   : > { %p713_p7 = pneg %p712_p5  ;;  %p717_p2 = por %p716_p1, %p715_p9 }
  0x3d   : > { %p719_p6 = por %p718_p4, %p717_p2 }
  0x3f   : > { %p720_p8 = pnand %p719_p6, %p713_p7 }
  0x41   : > { %723 = shalt.err (!%p720_p8)
}
  0x42   : > { %s724_s26 = scalar_lea.vmem %s974_s10, 128  ;;  %s830_s7 = smov [#allocation2]  }
  0x43   : > { %p725_p12 = scmp.ne.s32.totalorder %s974_s10, %s724_s26  ;;  %s729_s8 = sshll.u32 %s830_s7, 4  ;;  %s730_s8 = int_to_ptr.vmem [resolvable:$false] %s729_s8 }
  0x44   : > { %s731_s21 = scalar_lea.vmem %s730_s8, 256  ;;  %p732_p5 = scmp.lt.s32.totalorder %s974_s10, %s730_s8 }
  0x45   : > { %p727_p11 = pnand %p725_p12, %p711_p3  ;;  %p733_p9 = scmp.lt.s32.totalorder %s731_s21, %s724_s26 }
  0x47   : > { %p728_p0 = pneg %p727_p11  ;;  %p734_p1 = por %p733_p9, %p732_p5 }
  0x49   : > { %p735_p2 = pnand %p734_p1, %p728_p0 }
  0x4b   : > { %738 = shalt.err (!%p735_p2)
}
  0x4c   : > { %608 = dma.hbm_to_vmem [thread:$0]  (!%p978_p13), %s972_s9, 128, %s974_s10, %s178_s18  }
  0x4d   : > { %p1123_p7 = scmp.ne.s32.totalorder %s1117_s24, 0 }
  0x4e   : > { %s1010_s19 = sand.u32 (!%p1123_p7), 1, %s809_s13   ;;  %p1124_p3 = scmp.ne.s32.totalorder (!%p1123_p7), %s1115_s22, 0 }
  0x4f   : > { %197 = sbr.rel (%p1123_p7) target bundleno = 408 (0x198), region = 32  ;;  %s554_s25 = sshll.u32 (!%p1123_p7), %s1010_s19, 3 }
  0x50   : > { %s200_s27 = scalar_lea.sflag (!%p1123_p7), [#allocation3], %s1010_s19  ;;  %s203_s4 = scalar_lea.vmem (!%p1123_p7), [#allocation2], %s554_s25 }
  0x56   : > { %792 = dma.done.wait (%p1124_p3), %s200_s27, 128  }
  0x57   : > { %794 = vsyncadd (%p1124_p3), %s200_s27, 4294967168  ;;  %p1125_p13 = scmp.ne.s32.totalorder %s1113_s20, 0 }
  0x59   : > { %796 = dma.done.wait (%p1125_p13), [#allocation6], 512  }
  0x5a   : > { %798 = vsyncadd (%p1125_p13), [#allocation6], 4294966784  ;;  %v831_v0 = vmov 0.0|0.0   ;;  %vm832_vm0 = vmmov 0   ;;  %v833_v1 = vmov 0.0   ;;  %v237_v2 = vld [vmem:[#allocation5] sm:$0xff] }
  0x5b   : > { %583 = vmatprep.subr.bf16.mxu0 %v831_v0  ;;  %580 = vmatprep.mubr.msk.f32.mxu0 %vm832_vm0, %v833_v1  ;;  %v238_v3 = vld [vmem:[#allocation5 + $0x8] sm:$0xff]  ;;  %v239_v4 = vld [vmem:[#allocation5 + $0x10] sm:$0xff]  ;;  %v240_v6 = vld [vmem:[#allocation5 + $0x18] sm:$0xff]  ;;  %vm248_vm1 = vcmask 261120   ;;  %v834_v23 = vmov 683565275  }
  0x5c   : > { %v584_v5 = vpack.c.bf16 %v238_v3, %v237_v2  ;;  %v587_v7 = vpack.c.bf16 %v240_v6, %v239_v4  ;;  %v236_v8 = vld [vmem:[%s203_s4] sm:$0xff]  ;;  %v835_v25 = vmov 2475754826   ;;  %v836_v28 = vmov 2131351028   ;;  %s564_s24 = sshll.u32 %s817_s15, 7 }
  0x5d   : > { %v557_v9 = vld [vmem:[%s1107_s2] ss:$0 sm:$0xff]  ;;  %v837_v31 = vmov 2102212464   ;;  %v838_v34 = vmov 920167782   ;;  %s1055_s29 = scalar_lea.hbm %s1108_s3, %s564_s24 }
  0x5e   : > { %585 = vmatpush3.bf16.msra.mxu0 %v584_v5  ;;  %v839_v37 = vmov 1326507024   ;;  %s232_s9 = scalar_lea.vmem [#allocation7], %s554_s25  ;;  %s428_s15 = scalar_lea.sflag [#allocation4], %s1010_s19 }
  0x5f   : > { %586 = vmatprep.subr.bf16.mxu0 %v831_v0  ;;  %s442_s10 = sshll.u32 %s232_s9, 4  ;;  %s840_s26 = smov [#allocation7]   ;;  %s1057_s10 = int_to_ptr.vmem [resolvable:$true] %s442_s10 }
  0x60   : > { %s739_s6 = scalar_lea.vmem %s1057_s10, 128  ;;  %s743_s7 = sshll.u32 %s840_s26, 4  ;;  %s744_s7 = int_to_ptr.vmem [resolvable:$false] %s743_s7 }
  0x61   : > { %p740_p4 = scmp.ne.s32.totalorder %s1057_s10, %s739_s6  ;;  %s745_s8 = scalar_lea.vmem %s744_s7, 256 }
  0x62   : > { %588 = vmatpush3.bf16.msra.mxu0 %v587_v7  ;;  %p746_p12 = scmp.lt.s32.totalorder %s1057_s10, %s744_s7  ;;  %p747_p11 = scmp.lt.s32.totalorder %s745_s8, %s739_s6 }
  0x63   : > { %p741_p6 = pnand %p740_p4, %p957_p10 }
  0x64   : > { %p748_p0 = por %p747_p11, %p746_p12 }
  0x65   : > { %581 = vmatmul.mubr.msk.f32.vlgmr.msra.gmra.mrb[0].mxu0 %vm248_vm1, %v236_v8  ;;  %p742_p8 = pneg %p741_p6 }
  0x67   : > { %p749_p5 = pnand %p748_p0, %p742_p8 }
 0x138   : > { %v318_v10 = vpop.f32.mrb[0].mxu0 }
 0x139   : > { %v1028_v11 = vadd.f32 %v557_v9, %v318_v10  ;;  %v582_v12 = vpop.f32.mrb[1].mxu0 }
 0x13b   : > { %v325_v13 = vand.u32 2139095040, %v1028_v11  ;;  %v322_v17 = vand.u32 2147483647, %v1028_v11  ;;  %vm324_vm9 = vcmp.lt.s32.totalorder %v1028_v11, 0  ;;  %vm414_vm14 = vweird.f32 %v1028_v11 }
 0x13d   : > { %v326_v14 = vshrl.u32 %v325_v13, 23  ;;  %v329_v20 = vand.u32 8388607, %v322_v17  ;;  %vm323_vm10 = vcmp.le.f32.partialorder %v322_v17, 0.7853982 }
 0x13f   : > { %v559_v15 = vadd.s32 4294967169, %v326_v14  ;;  %v330_v39 = vor.u32 8388608, %v329_v20 }
 0x141   : > { %v332_v16 = vadd.s32 1, %v559_v15  ;;  %v370_v53 = vshll.u32 %v330_v39, 8 }
 0x143   : > { %vm333_vm2 = vcmp.gt.s32.totalorder %v332_v16, 0 }
 0x144   : > { %v334_v18 = vsel %vm333_vm2, %v332_v16, 0 }
 0x145   : > { %v336_v19 = vand.u32 31, %v334_v18  ;;  %v335_v22 = vshrl.u32 %v334_v18, 5 }
 0x147   : > { %v337_v21 = vsub.s32 32, %v336_v19  ;;  %v339_v24 = vshll.u32 %v834_v23, %v336_v19  ;;  %v342_v26 = vshll.u32 %v835_v25, %v336_v19  ;;  %v345_v30 = vshll.u32 %v836_v28, %v336_v19 }
 0x148   : > { %v348_v33 = vshll.u32 %v837_v31, %v336_v19  ;;  %v351_v36 = vshll.u32 %v838_v34, %v336_v19  ;;  %vm354_vm3 = vcmp.lt.s32.totalorder %v335_v22, 1  ;;  %vm357_vm4 = vcmp.lt.s32.totalorder %v335_v22, 4 }
 0x149   : > { %v340_v27 = vshrl.u32 %v835_v25, %v337_v21  ;;  %v343_v29 = vshrl.u32 %v836_v28, %v337_v21  ;;  %v346_v32 = vshrl.u32 %v837_v31, %v337_v21  ;;  %v349_v35 = vshrl.u32 %v838_v34, %v337_v21 }
 0x14a   : > { %v352_v38 = vshrl.u32 %v839_v37, %v337_v21  ;;  %v338_v48 = vshrl.u32 %v834_v23, %v337_v21  ;;  %vm356_vm5 = vcmp.lt.s32.totalorder %v335_v22, 3  ;;  %vm355_vm6 = vcmp.lt.s32.totalorder %v335_v22, 2 }
 0x14b   : > { %v341_v40 = vor.u32 %v340_v27, %v339_v24  ;;  %v344_v41 = vor.u32 %v343_v29, %v342_v26  ;;  %v347_v42 = vor.u32 %v346_v32, %v345_v30  ;;  %v350_v43 = vor.u32 %v349_v35, %v348_v33 }
 0x14c   : > { %v353_v44 = vor.u32 %v352_v38, %v351_v36 }
 0x14d   : > { %v359_v45 = vsel %vm357_vm4, %v347_v42, 2102212464  ;;  %v362_v46 = vsel %vm354_vm3, %v341_v40, %v344_v41  ;;  %v366_v47 = vsel %vm354_vm3, %v344_v41, %v347_v42  ;;  %v363_v49 = vsel %vm357_vm4, %v350_v43, 920167782 }
 0x14e   : > { %v367_v50 = vsel %vm357_vm4, %v353_v44, 1326507024  ;;  %v364_v51 = vsel %vm356_vm5, %v347_v42, %v363_v49  ;;  %v358_v54 = vsel %vm354_vm3, %v338_v48, %v341_v40  ;;  %v360_v55 = vsel %vm356_vm5, %v344_v41, %v359_v45 }
 0x14f   : > { %v368_v52 = vsel %vm356_vm5, %v350_v43, %v367_v50  ;;  %v365_v56 = vsel %vm355_vm6, %v362_v46, %v364_v51  ;;  %v361_v62 = vsel %vm355_vm6, %v358_v54, %v360_v55 }
 0x150   : > { %v369_v57 = vsel %vm355_vm6, %v366_v47, %v368_v52  ;;  %v1037_v60 = vmul.u32.u64.low %v370_v53, %v365_v56  ;;  %v1038_v61 = vmul.u32.u64.high %v370_v53, %v365_v56, %v1037_v60  ;;  %v377_v0 = vmul.u32 %v370_v53, %v361_v62 }
 0x151   : > { %v1034_v58 = vmul.u32.u64.low %v370_v53, %v369_v57  ;;  %v1035_v59 = vmul.u32.u64.high %v370_v53, %v369_v57, %v1034_v58 }
 0x152   : > { %v380_v63 = vadd.s32 1, %v1038_v61 }
 0x153   : > { %vm379_vm7 = vc.u32 %v1035_v59, %v1037_v60  ;;  %v378_v13 = vadd.s32 %v1037_v60, %v1035_v59 }
 0x154   : > { %v381_v1 = vsel %vm379_vm7, %v380_v63, %v1038_v61 }
 0x155   : > { %v382_v2 = vadd.s32 %v381_v1, %v377_v0 }
 0x157   : > { %v383_v3 = vadd.s32 536870912, %v382_v2 }
 0x159   : > { %v384_v4 = vshrl.u32 %v383_v3, 30 }
 0x15b   : > { %v385_v5 = vshll.u32 %v384_v4, 30  ;;  %v408_v26 = vsub.s32 4, %v384_v4 }
 0x15d   : > { %v386_v6 = vsub.s32 %v382_v2, %v385_v5  ;;  %v409_v29 = vsel %vm324_vm9, %v408_v26, %v384_v4 }
 0x15e   : > { %v411_v31 = vsel %vm323_vm10, 0, %v409_v29 }
 0x15f   : > { %v388_v7 = vsub.s32 0, %v386_v6  ;;  %v415_v32 = vadd.s32 3, %v411_v31 }
 0x161   : > { %v560_v8 = vmin.u32 %v388_v7, %v386_v6  ;;  %v416_v33 = vand.u32 3, %v415_v32 }
 0x163   : > { %v390_v9 = vclz %v560_v8  ;;  %vm421_vm11 = vcmp.eq.s32.totalorder %v416_v33, 2  ;;  %vm418_vm12 = vcmp.eq.s32.totalorder %v416_v33, 0  ;;  %vm417_vm13 = vcmp.lt.s32.totalorder %v416_v33, 2 }
 0x165   : > { %v561_v10 = vadd.s32 4294967294, %v390_v9 }
 0x167   : > { %vm562_vm8 = vcmp.lt.s32.totalorder %v561_v10, 0 }
 0x168   : > { %v393_v12 = vsel %vm562_vm8, 0, %v561_v10 }
 0x169   : > { %v394_v14 = vsub.s32 32, %v393_v12  ;;  %v398_v15 = vsub.s32 4294967266, %v393_v12  ;;  %v395_v16 = vshll.u32 %v386_v6, %v393_v12 }
 0x16b   : > { %v396_v18 = vshrl.u32 %v378_v13, %v394_v14  ;;  %v399_v19 = vadd.s32 127, %v398_v15 }
 0x16d   : > { %v397_v20 = vor.u32 %v396_v18, %v395_v16  ;;  %v400_v21 = vshll.u32 %v399_v19, 23 }
 0x16f   : > { %v401_v22 = vor.u32 4788187, %v400_v21  ;;  %v404_v24 = vcvt.s32.f32 %v397_v20 }
 0x171   : > { %v402_v23 = vand.u32 2147483647, %v401_v22 }
 0x173   : > { %v405_v25 = vmul.f32 %v404_v24, %v402_v23 }
 0x175   : > { %v406_v27 = vxor.u32 2147483648, %v405_v25 }
 0x177   : > { %v407_v28 = vsel %vm324_vm9, %v406_v27, %v405_v25 }
 0x178   : > { %v410_v30 = vsel %vm323_vm10, %v1028_v11, %v407_v28 }
 0x179   : > { %677 = vcosq.f32 %v410_v30 }
 0x17a   : > { %679 = vsinq.f32 %v410_v30 }
 0x183   : > { %v678_v34 = vpop.eup %677 }
 0x184   : > { %v680_v35 = vpop.eup %679  ;;  %v422_v36 = vxor.u32 2147483648, %v678_v34 }
 0x185   : > { %v419_v37 = vxor.u32 2147483648, %v680_v35 }
 0x186   : > { %v423_v17 = vsel %vm421_vm11, %v422_v36, %v680_v35 }
 0x187   : > { %v420_v38 = vsel %vm418_vm12, %v678_v34, %v419_v37 }
 0x188   : > { %v424_v39 = vsel %vm417_vm13, %v420_v38, %v423_v17 }
 0x189   : > { %v425_v40 = vsel %vm414_vm14, nan, %v424_v39 }
 0x18a   : > { %426 = vst.msk [vmem:[%s232_s9] sm:$0xff] %vm248_vm1, %v425_v40 }
 0x18b   : > { %752 = shalt.err (!%p749_p5)
}
 0x18c   : > { %s753_s21 = scalar_lea.hbm %s1055_s29, 128  ;;  %s757_s27 = scalar_lea.hbm %s1108_s3, 256 }
 0x18d   : > { %p754_p9 = scmp.ne.s32.totalorder %s1055_s29, %s753_s21  ;;  %p758_p7 = scmp.lt.u32.totalorder %s1055_s29, %s1108_s3 }
 0x18e   : > { %p759_p3 = scmp.lt.u32.totalorder %s757_s27, %s753_s21  ;;  %p761_p4 = scmp.lt.u32.totalorder %s753_s21, %s1055_s29 }
 0x18f   : > { %p755_p1 = pnand %p754_p9, %p957_p10 }
 0x190   : > { %p760_p13 = por %p759_p3, %p758_p7 }
 0x191   : > { %p756_p2 = pneg %p755_p1 }
 0x192   : > { %p762_p6 = por %p761_p4, %p760_p13 }
 0x194   : > { %p763_p8 = pnand %p762_p6, %p756_p2 }
 0x196   : > { %766 = shalt.err (!%p763_p8)
}
 0x197   : > { %599 = dma.vmem_to_hbm [thread:$0]  (%p957_p10), %s1057_s10, 128, %s1055_s29, %s428_s15  }
 0x198 PF: > { %s454_s22 = sand.u32 1, %s805_s12   ;;  %p1126_p12 = scmp.ne.s32.totalorder %s1116_s23, 0 }
 0x199   : > { %p1127_p11 = scmp.ge.s32.totalorder %s825_s17, 2  ;;  %s455_s24 = scalar_lea.sflag [#allocation4], %s454_s22 }
 0x19b   : > { %p610_p0 = pnand %p1127_p11, %p1126_p12 }
 0x19d   : > { %800 = dma.done.wait (!%p610_p0), %s455_s24, 128  }
 0x19e   : > { %802 = vsyncadd (!%p610_p0), %s455_s24, 4294967168  ;;  %s20_s17 = sadd.s32 1, %s825_s17   ;;  %s1128_s12 = smov %s809_s13 }
 0x19f   : > { %p17_p5 = scmp.ge.s32.totalorder %s20_s17, 4   ;;  %s1129_s13 = smov %s813_s14 }
 0x1a0   : > { %s1130_s14 = smov %s966_s5  ;;  %s1131_s15 = smov %s821_s16 }
 0x1a1   : > { %s1132_s16 = smov %s1134_s28  ;;  %19 = sbr.rel (!%p17_p5) target bundleno = 7 (0x7), region = 85 }
 0x1a8   :  { %460 = vsyncpa [#allocation3], 1 }
 0x1a9   :  { %462 = vsyncpa [#allocation3 + $0x1], 1 }
 0x1aa   :  { %463 = vsyncpa [#allocation6], 1 }
 0x1ab   :  { %464 = vsyncpa [#allocation4], 1 }
 0x1ac   :  { %466 = vsyncpa [#allocation4 + $0x1], 1 }

// kernel: tpu_custom_call.1
= control target key start
LH: loop header
LB: loop body
LE: loop exit
PB: predicated region body
PF: predicated region fallthrough
CT: control target
= control target key end

     0   :  { %8 = vsyncpa [#allocation3], 0  ;;  %s1105_s0 = inlined_call_operand.hbm [shape: f32[16,32], index: 0, kind: input, shape index: {}]   ;;  %s1106_s1 = inlined_call_operand.hbm [shape: f32[32,32], index: 1, kind: input, shape index: {}]   ;;  %s1107_s2 = inlined_call_operand.vmem [shape: f32[1,32], index: 2, kind: input, shape index: {}]   ;;  %s1108_s3 = inlined_call_operand.hbm [shape: f32[16,32], index: 3, kind: output, shape index: {}]  }
   0x1   :  { %10 = vsyncpa [#allocation3 + $0x1], 0 }
   0x2   :  { %11 = vsyncpa [#allocation6], 0 }
   0x3   :  { %12 = vsyncpa [#allocation4], 0 }
   0x4   :  { %14 = vsyncpa [#allocation4 + $0x1], 0  ;;  %s861_s12 = smov 0   ;;  %s863_s13 = smov 0  }
   0x5   :  { %s865_s14 = smov 0   ;;  %s867_s15 = smov 0  }
   0x6   :  { %s869_s16 = smov 0   ;;  %s871_s17 = smov 0  }
   0x7 LB: > { %s545_s18 = sadd.s32 4294967295, %s825_s17   ;;  %s546_s19 = sadd.s32 4294967294, %s825_s17   ;;  %s825_s17 = sphi %s871_s17, %s20_s17   ;;  %s821_s16 = sphi %s869_s16, %s1132_s16   ;;  %s817_s15 = sphi %s867_s15, %s1131_s15   ;;  %s813_s14 = sphi %s865_s14, %s1130_s14   ;;  %s809_s13 = sphi %s863_s13, %s1129_s13   ;;  %s805_s12 = sphi %s861_s12, %s1128_s12  }
   0x8   : > { %p52_p0 = scmp.ne.s32.totalorder %s809_s13, %s805_s12  ;;  %p895_p1 = scmp.eq.s32.totalorder %s545_s18, 0 }
   0x9   : > { %p899_p2 = scmp.eq.s32.totalorder %s545_s18, 1  ;;  %p136_p3 = scmp.eq.s32.totalorder %s546_s19, 1 }
   0xa   : > { %s1113_s20 = scalar_select %p895_p1, 1, 0 }
   0xb   : > { %s1114_s21 = scalar_select %p899_p2, 1, 0 }
   0xc   : > { %p905_p4 = por %p895_p1, %p52_p0  ;;  %p547_p5 = scmp.ge.s32.totalorder %s825_s17, 1 }
   0xd   : > { %p910_p6 = por %p136_p3, %p52_p0  ;;  %p143_p7 = scmp.lt.s32.totalorder %s825_s17, 3 }
   0xe   : > { %s1115_s22 = scalar_select %p905_p4, 1, 0 }
   0xf   : > { %s1116_s23 = scalar_select %p910_p6, 1, 0 }
  0x10   : > { %p915_p8 = pnand %p547_p5, %p143_p7  ;;  %s827_s25 = smov [#allocation5]  }
  0x11   : > { %s157_s26 = sshll.u32 %s827_s25, 4  ;;  %s29_s28 = sadd.s32 1, %s821_s16  ;;  %s158_s26 = int_to_ptr.vmem [resolvable:$true] %s157_s26 }
  0x12   : > { %s1117_s24 = scalar_select %p915_p8, 1, 0 }
  0x13   : > { %p601_p9 = pneg %p915_p8  ;;  %s681_s4 = scalar_lea.hbm %s1106_s1, 512 }
  0x14   : > { %p682_p12 = scmp.ne.s32.totalorder %s1106_s1, %s681_s4  ;;  %p688_p5 = scmp.lt.u32.totalorder %s681_s4, %s1106_s1 }
  0x15   : > { %p924_p11 = pnand %p601_p9, %p895_p1 }
  0x17   : > { %p683_p13 = pneg %p924_p11 }
  0x19   : > { %p684_p0 = pnand %p683_p13, %p682_p12 }
  0x1b   : > { %p685_p3 = pneg %p684_p0 }
  0x1d   : > { %p690_p7 = pnand %p688_p5, %p685_p3 }
  0x1f   : > { %693 = shalt.err (!%p690_p7)
}
  0x20   : > { %s694_s9 = scalar_lea.vmem %s158_s26, 512  ;;  %p702_p1 = scmp.lt.s32.totalorder %s158_s26, %s158_s26 }
  0x21   : > { %p695_p9 = scmp.ne.s32.totalorder %s158_s26, %s694_s9  ;;  %p703_p4 = scmp.lt.s32.totalorder %s694_s9, %s694_s9 }
  0x23   : > { %p697_p10 = pnand %p695_p9, %p683_p13  ;;  %p704_p8 = por %p703_p4, %p702_p1 }
  0x25   : > { %p698_p6 = pneg %p697_p10 }
  0x27   : > { %p705_p2 = pnand %p704_p8, %p698_p6 }
  0x29   : > { %708 = shalt.err (!%p705_p2)
}
  0x2a   : > { %s828_s10 = smov 128   ;;  %s829_s11 = smov 8  }
  0x2b   : > { %604 = dma.hbm_to_vmem [thread:$0]  (!%p924_p11), %s1106_s1, 512, %s158_s26, [#allocation6], %s828_s10, %s828_s10, %s829_s11  }
  0x2c   : > { %p30_p1 = scmp.ge.s32.totalorder %s29_s28, 2  ;;  %s39_s25 = sadd.s32 1, %s813_s14 }
  0x2d   : > { %p46_p2 = scmp.ne.s32.totalorder %s813_s14, %s809_s13  ;;  %p47_p4 = scmp.eq.s32.totalorder %s825_s17, 0 }
  0x2e   : > { %s1134_s28 = smov (%p30_p1, %s29_s28), 0  ;;  %p1120_p8 = scmp.ne.s32.totalorder %s1114_s21, 0 }
  0x2f   : > { %p951_p6 = por %p47_p4, %p46_p2  ;;  %s36_s27 = ssub.s32 %s821_s16, %s1134_s28 }
  0x30   : > { %p957_p10 = por %p1120_p8, %p46_p2  ;;  %p614_p12 = scmp.lt.s32.totalorder %s825_s17, 2 }
  0x31   : > { %p37_p11 = scmp.eq.s32.totalorder %s36_s27, 0  ;;  %s177_s26 = sand.u32 1, %s813_s14  }
  0x32   : > { %s551_s4 = sshll.u32 %s177_s26, 3  ;;  %s552_s6 = sshll.u32 %s821_s16, 7 }
  0x33   : > { %s966_s5 = scalar_select %p37_p11, %s813_s14, %s39_s25  }
  0x34   : > { %s972_s9 = scalar_lea.hbm %s1105_s0, %s552_s6  ;;  %s181_s21 = scalar_lea.vmem [#allocation2], %s551_s4 }
  0x35   : > { %s188_s10 = sshll.u32 %s181_s21, 4  ;;  %p978_p13 = pnand %p614_p12, %p951_p6  ;;  %s974_s10 = int_to_ptr.vmem [resolvable:$true] %s188_s10 }
  0x36   : > { %s178_s18 = scalar_lea.sflag [#allocation3], %s177_s26  ;;  %s709_s19 = scalar_lea.hbm %s972_s9, 128 }
  0x37   : > { %p710_p0 = scmp.ne.s32.totalorder %s972_s9, %s709_s19  ;;  %p711_p3 = pneg %p978_p13 }
  0x38   : > { %s714_s4 = scalar_lea.hbm %s1105_s0, 256  ;;  %p715_p9 = scmp.lt.u32.totalorder %s972_s9, %s1105_s0 }
  0x39   : > { %p712_p5 = pnand %p711_p3, %p710_p0  ;;  %p716_p1 = scmp.lt.u32.totalorder %s714_s4, %s709_s19 }
  0x3a   : > { %p718_p4 = scmp.lt.u32.totalorder %s709_s19, %s972_s9 }
  0x3b   : > { %p713_p7 = pneg %p712_p5  ;;  %p717_p2 = por %p716_p1, %p715_p9 }
  0x3d   : > { %p719_p6 = por %p718_p4, %p717_p2 }
  0x3f   : > { %p720_p8 = pnand %p719_p6, %p713_p7 }
  0x41   : > { %723 = shalt.err (!%p720_p8)
}
  0x42   : > { %s724_s26 = scalar_lea.vmem %s974_s10, 128  ;;  %s830_s7 = smov [#allocation2]  }
  0x43   : > { %p725_p12 = scmp.ne.s32.totalorder %s974_s10, %s724_s26  ;;  %s729_s8 = sshll.u32 %s830_s7, 4  ;;  %s730_s8 = int_to_ptr.vmem [resolvable:$false] %s729_s8 }
  0x44   : > { %s731_s21 = scalar_lea.vmem %s730_s8, 256  ;;  %p732_p5 = scmp.lt.s32.totalorder %s974_s10, %s730_s8 }
  0x45   : > { %p727_p11 = pnand %p725_p12, %p711_p3  ;;  %p733_p9 = scmp.lt.s32.totalorder %s731_s21, %s724_s26 }
  0x47   : > { %p728_p0 = pneg %p727_p11  ;;  %p734_p1 = por %p733_p9, %p732_p5 }
  0x49   : > { %p735_p2 = pnand %p734_p1, %p728_p0 }
  0x4b   : > { %738 = shalt.err (!%p735_p2)
}
  0x4c   : > { %608 = dma.hbm_to_vmem [thread:$0]  (!%p978_p13), %s972_s9, 128, %s974_s10, %s178_s18  }
  0x4d   : > { %p1123_p7 = scmp.ne.s32.totalorder %s1117_s24, 0 }
  0x4e   : > { %s1010_s19 = sand.u32 (!%p1123_p7), 1, %s809_s13   ;;  %p1124_p3 = scmp.ne.s32.totalorder (!%p1123_p7), %s1115_s22, 0 }
  0x4f   : > { %197 = sbr.rel (%p1123_p7) target bundleno = 408 (0x198), region = 32  ;;  %s554_s25 = sshll.u32 (!%p1123_p7), %s1010_s19, 3 }
  0x50   : > { %s200_s27 = scalar_lea.sflag (!%p1123_p7), [#allocation3], %s1010_s19  ;;  %s203_s4 = scalar_lea.vmem (!%p1123_p7), [#allocation2], %s554_s25 }
  0x56   : > { %792 = dma.done.wait (%p1124_p3), %s200_s27, 128  }
  0x57   : > { %794 = vsyncadd (%p1124_p3), %s200_s27, 4294967168  ;;  %p1125_p13 = scmp.ne.s32.totalorder %s1113_s20, 0 }
  0x59   : > { %796 = dma.done.wait (%p1125_p13), [#allocation6], 512  }
  0x5a   : > { %798 = vsyncadd (%p1125_p13), [#allocation6], 4294966784  ;;  %v831_v0 = vmov 0.0|0.0   ;;  %vm832_vm0 = vmmov 0   ;;  %v833_v1 = vmov 0.0   ;;  %v237_v2 = vld [vmem:[#allocation5] sm:$0xff] }
  0x5b   : > { %583 = vmatprep.subr.bf16.mxu0 %v831_v0  ;;  %580 = vmatprep.mubr.msk.f32.mxu0 %vm832_vm0, %v833_v1  ;;  %v238_v3 = vld [vmem:[#allocation5 + $0x8] sm:$0xff]  ;;  %v239_v4 = vld [vmem:[#allocation5 + $0x10] sm:$0xff]  ;;  %v240_v6 = vld [vmem:[#allocation5 + $0x18] sm:$0xff]  ;;  %vm248_vm1 = vcmask 261120   ;;  %v834_v23 = vmov 683565275  }
  0x5c   : > { %v584_v5 = vpack.c.bf16 %v238_v3, %v237_v2  ;;  %v587_v7 = vpack.c.bf16 %v240_v6, %v239_v4  ;;  %v236_v8 = vld [vmem:[%s203_s4] sm:$0xff]  ;;  %v835_v25 = vmov 2475754826   ;;  %v836_v28 = vmov 2131351028   ;;  %s564_s24 = sshll.u32 %s817_s15, 7 }
  0x5d   : > { %v557_v9 = vld [vmem:[%s1107_s2] ss:$0 sm:$0xff]  ;;  %v837_v31 = vmov 2102212464   ;;  %v838_v34 = vmov 920167782   ;;  %s1055_s29 = scalar_lea.hbm %s1108_s3, %s564_s24 }
  0x5e   : > { %585 = vmatpush3.bf16.msra.mxu0 %v584_v5  ;;  %v839_v37 = vmov 1326507024   ;;  %s232_s9 = scalar_lea.vmem [#allocation7], %s554_s25  ;;  %s428_s15 = scalar_lea.sflag [#allocation4], %s1010_s19 }
  0x5f   : > { %586 = vmatprep.subr.bf16.mxu0 %v831_v0  ;;  %s442_s10 = sshll.u32 %s232_s9, 4  ;;  %s840_s26 = smov [#allocation7]   ;;  %s1057_s10 = int_to_ptr.vmem [resolvable:$true] %s442_s10 }
  0x60   : > { %s739_s6 = scalar_lea.vmem %s1057_s10, 128  ;;  %s743_s7 = sshll.u32 %s840_s26, 4  ;;  %s744_s7 = int_to_ptr.vmem [resolvable:$false] %s743_s7 }
  0x61   : > { %p740_p4 = scmp.ne.s32.totalorder %s1057_s10, %s739_s6  ;;  %s745_s8 = scalar_lea.vmem %s744_s7, 256 }
  0x62   : > { %588 = vmatpush3.bf16.msra.mxu0 %v587_v7  ;;  %p746_p12 = scmp.lt.s32.totalorder %s1057_s10, %s744_s7  ;;  %p747_p11 = scmp.lt.s32.totalorder %s745_s8, %s739_s6 }
  0x63   : > { %p741_p6 = pnand %p740_p4, %p957_p10 }
  0x64   : > { %p748_p0 = por %p747_p11, %p746_p12 }
  0x65   : > { %581 = vmatmul.mubr.msk.f32.vlgmr.msra.gmra.mrb[0].mxu0 %vm248_vm1, %v236_v8  ;;  %p742_p8 = pneg %p741_p6 }
  0x67   : > { %p749_p5 = pnand %p748_p0, %p742_p8 }
 0x138   : > { %v318_v10 = vpop.f32.mrb[0].mxu0 }
 0x139   : > { %v1028_v11 = vadd.f32 %v557_v9, %v318_v10  ;;  %v582_v12 = vpop.f32.mrb[1].mxu0 }
 0x13b   : > { %v325_v13 = vand.u32 2139095040, %v1028_v11  ;;  %v322_v17 = vand.u32 2147483647, %v1028_v11  ;;  %vm324_vm9 = vcmp.lt.s32.totalorder %v1028_v11, 0  ;;  %vm414_vm14 = vweird.f32 %v1028_v11 }
 0x13d   : > { %v326_v14 = vshrl.u32 %v325_v13, 23  ;;  %v329_v20 = vand.u32 8388607, %v322_v17  ;;  %vm323_vm10 = vcmp.le.f32.partialorder %v322_v17, 0.7853982 }
 0x13f   : > { %v559_v15 = vadd.s32 4294967169, %v326_v14  ;;  %v330_v39 = vor.u32 8388608, %v329_v20 }
 0x141   : > { %v332_v16 = vadd.s32 1, %v559_v15  ;;  %v370_v53 = vshll.u32 %v330_v39, 8 }
 0x143   : > { %vm333_vm2 = vcmp.gt.s32.totalorder %v332_v16, 0 }
 0x144   : > { %v334_v18 = vsel %vm333_vm2, %v332_v16, 0 }
 0x145   : > { %v336_v19 = vand.u32 31, %v334_v18  ;;  %v335_v22 = vshrl.u32 %v334_v18, 5 }
 0x147   : > { %v337_v21 = vsub.s32 32, %v336_v19  ;;  %v339_v24 = vshll.u32 %v834_v23, %v336_v19  ;;  %v342_v26 = vshll.u32 %v835_v25, %v336_v19  ;;  %v345_v30 = vshll.u32 %v836_v28, %v336_v19 }
 0x148   : > { %v348_v33 = vshll.u32 %v837_v31, %v336_v19  ;;  %v351_v36 = vshll.u32 %v838_v34, %v336_v19  ;;  %vm354_vm3 = vcmp.lt.s32.totalorder %v335_v22, 1  ;;  %vm357_vm4 = vcmp.lt.s32.totalorder %v335_v22, 4 }
 0x149   : > { %v340_v27 = vshrl.u32 %v835_v25, %v337_v21  ;;  %v343_v29 = vshrl.u32 %v836_v28, %v337_v21  ;;  %v346_v32 = vshrl.u32 %v837_v31, %v337_v21  ;;  %v349_v35 = vshrl.u32 %v838_v34, %v337_v21 }
 0x14a   : > { %v352_v38 = vshrl.u32 %v839_v37, %v337_v21  ;;  %v338_v48 = vshrl.u32 %v834_v23, %v337_v21  ;;  %vm356_vm5 = vcmp.lt.s32.totalorder %v335_v22, 3  ;;  %vm355_vm6 = vcmp.lt.s32.totalorder %v335_v22, 2 }
 0x14b   : > { %v341_v40 = vor.u32 %v340_v27, %v339_v24  ;;  %v344_v41 = vor.u32 %v343_v29, %v342_v26  ;;  %v347_v42 = vor.u32 %v346_v32, %v345_v30  ;;  %v350_v43 = vor.u32 %v349_v35, %v348_v33 }
 0x14c   : > { %v353_v44 = vor.u32 %v352_v38, %v351_v36 }
 0x14d   : > { %v359_v45 = vsel %vm357_vm4, %v347_v42, 2102212464  ;;  %v362_v46 = vsel %vm354_vm3, %v341_v40, %v344_v41  ;;  %v366_v47 = vsel %vm354_vm3, %v344_v41, %v347_v42  ;;  %v363_v49 = vsel %vm357_vm4, %v350_v43, 920167782 }
 0x14e   : > { %v367_v50 = vsel %vm357_vm4, %v353_v44, 1326507024  ;;  %v364_v51 = vsel %vm356_vm5, %v347_v42, %v363_v49  ;;  %v358_v54 = vsel %vm354_vm3, %v338_v48, %v341_v40  ;;  %v360_v55 = vsel %vm356_vm5, %v344_v41, %v359_v45 }
 0x14f   : > { %v368_v52 = vsel %vm356_vm5, %v350_v43, %v367_v50  ;;  %v365_v56 = vsel %vm355_vm6, %v362_v46, %v364_v51  ;;  %v361_v62 = vsel %vm355_vm6, %v358_v54, %v360_v55 }
 0x150   : > { %v369_v57 = vsel %vm355_vm6, %v366_v47, %v368_v52  ;;  %v1037_v60 = vmul.u32.u64.low %v370_v53, %v365_v56  ;;  %v1038_v61 = vmul.u32.u64.high %v370_v53, %v365_v56, %v1037_v60  ;;  %v377_v0 = vmul.u32 %v370_v53, %v361_v62 }
 0x151   : > { %v1034_v58 = vmul.u32.u64.low %v370_v53, %v369_v57  ;;  %v1035_v59 = vmul.u32.u64.high %v370_v53, %v369_v57, %v1034_v58 }
 0x152   : > { %v380_v63 = vadd.s32 1, %v1038_v61 }
 0x153   : > { %vm379_vm7 = vc.u32 %v1035_v59, %v1037_v60  ;;  %v378_v13 = vadd.s32 %v1037_v60, %v1035_v59 }
 0x154   : > { %v381_v1 = vsel %vm379_vm7, %v380_v63, %v1038_v61 }
 0x155   : > { %v382_v2 = vadd.s32 %v381_v1, %v377_v0 }
 0x157   : > { %v383_v3 = vadd.s32 536870912, %v382_v2 }
 0x159   : > { %v384_v4 = vshrl.u32 %v383_v3, 30 }
 0x15b   : > { %v385_v5 = vshll.u32 %v384_v4, 30  ;;  %v408_v26 = vsub.s32 4, %v384_v4 }
 0x15d   : > { %v386_v6 = vsub.s32 %v382_v2, %v385_v5  ;;  %v409_v29 = vsel %vm324_vm9, %v408_v26, %v384_v4 }
 0x15e   : > { %v411_v31 = vsel %vm323_vm10, 0, %v409_v29 }
 0x15f   : > { %v388_v7 = vsub.s32 0, %v386_v6  ;;  %v415_v32 = vadd.s32 3, %v411_v31 }
 0x161   : > { %v560_v8 = vmin.u32 %v388_v7, %v386_v6  ;;  %v416_v33 = vand.u32 3, %v415_v32 }
 0x163   : > { %v390_v9 = vclz %v560_v8  ;;  %vm421_vm11 = vcmp.eq.s32.totalorder %v416_v33, 2  ;;  %vm418_vm12 = vcmp.eq.s32.totalorder %v416_v33, 0  ;;  %vm417_vm13 = vcmp.lt.s32.totalorder %v416_v33, 2 }
 0x165   : > { %v561_v10 = vadd.s32 4294967294, %v390_v9 }
 0x167   : > { %vm562_vm8 = vcmp.lt.s32.totalorder %v561_v10, 0 }
 0x168   : > { %v393_v12 = vsel %vm562_vm8, 0, %v561_v10 }
 0x169   : > { %v394_v14 = vsub.s32 32, %v393_v12  ;;  %v398_v15 = vsub.s32 4294967266, %v393_v12  ;;  %v395_v16 = vshll.u32 %v386_v6, %v393_v12 }
 0x16b   : > { %v396_v18 = vshrl.u32 %v378_v13, %v394_v14  ;;  %v399_v19 = vadd.s32 127, %v398_v15 }
 0x16d   : > { %v397_v20 = vor.u32 %v396_v18, %v395_v16  ;;  %v400_v21 = vshll.u32 %v399_v19, 23 }
 0x16f   : > { %v401_v22 = vor.u32 4788187, %v400_v21  ;;  %v404_v24 = vcvt.s32.f32 %v397_v20 }
 0x171   : > { %v402_v23 = vand.u32 2147483647, %v401_v22 }
 0x173   : > { %v405_v25 = vmul.f32 %v404_v24, %v402_v23 }
 0x175   : > { %v406_v27 = vxor.u32 2147483648, %v405_v25 }
 0x177   : > { %v407_v28 = vsel %vm324_vm9, %v406_v27, %v405_v25 }
 0x178   : > { %v410_v30 = vsel %vm323_vm10, %v1028_v11, %v407_v28 }
 0x179   : > { %677 = vcosq.f32 %v410_v30 }
 0x17a   : > { %679 = vsinq.f32 %v410_v30 }
 0x183   : > { %v678_v34 = vpop.eup %677 }
 0x184   : > { %v680_v35 = vpop.eup %679  ;;  %v422_v36 = vxor.u32 2147483648, %v678_v34 }
 0x185   : > { %v419_v37 = vxor.u32 2147483648, %v680_v35 }
 0x186   : > { %v423_v17 = vsel %vm421_vm11, %v422_v36, %v680_v35 }
 0x187   : > { %v420_v38 = vsel %vm418_vm12, %v678_v34, %v419_v37 }
 0x188   : > { %v424_v39 = vsel %vm417_vm13, %v420_v38, %v423_v17 }
 0x189   : > { %v425_v40 = vsel %vm414_vm14, nan, %v424_v39 }
 0x18a   : > { %426 = vst.msk [vmem:[%s232_s9] sm:$0xff] %vm248_vm1, %v425_v40 }
 0x18b   : > { %752 = shalt.err (!%p749_p5)
}
 0x18c   : > { %s753_s21 = scalar_lea.hbm %s1055_s29, 128  ;;  %s757_s27 = scalar_lea.hbm %s1108_s3, 256 }
 0x18d   : > { %p754_p9 = scmp.ne.s32.totalorder %s1055_s29, %s753_s21  ;;  %p758_p7 = scmp.lt.u32.totalorder %s1055_s29, %s1108_s3 }
 0x18e   : > { %p759_p3 = scmp.lt.u32.totalorder %s757_s27, %s753_s21  ;;  %p761_p4 = scmp.lt.u32.totalorder %s753_s21, %s1055_s29 }
 0x18f   : > { %p755_p1 = pnand %p754_p9, %p957_p10 }
 0x190   : > { %p760_p13 = por %p759_p3, %p758_p7 }
 0x191   : > { %p756_p2 = pneg %p755_p1 }
 0x192   : > { %p762_p6 = por %p761_p4, %p760_p13 }
 0x194   : > { %p763_p8 = pnand %p762_p6, %p756_p2 }
 0x196   : > { %766 = shalt.err (!%p763_p8)
}
 0x197   : > { %599 = dma.vmem_to_hbm [thread:$0]  (%p957_p10), %s1057_s10, 128, %s1055_s29, %s428_s15  }
 0x198 PF: > { %s454_s22 = sand.u32 1, %s805_s12   ;;  %p1126_p12 = scmp.ne.s32.totalorder %s1116_s23, 0 }
 0x199   : > { %p1127_p11 = scmp.ge.s32.totalorder %s825_s17, 2  ;;  %s455_s24 = scalar_lea.sflag [#allocation4], %s454_s22 }
 0x19b   : > { %p610_p0 = pnand %p1127_p11, %p1126_p12 }
 0x19d   : > { %800 = dma.done.wait (!%p610_p0), %s455_s24, 128  }
 0x19e   : > { %802 = vsyncadd (!%p610_p0), %s455_s24, 4294967168  ;;  %s20_s17 = sadd.s32 1, %s825_s17   ;;  %s1128_s12 = smov %s809_s13 }
 0x19f   : > { %p17_p5 = scmp.ge.s32.totalorder %s20_s17, 4   ;;  %s1129_s13 = smov %s813_s14 }
 0x1a0   : > { %s1130_s14 = smov %s966_s5  ;;  %s1131_s15 = smov %s821_s16 }
 0x1a1   : > { %s1132_s16 = smov %s1134_s28  ;;  %19 = sbr.rel (!%p17_p5) target bundleno = 7 (0x7), region = 85 }
 0x1a8   :  { %460 = vsyncpa [#allocation3], 1 }
 0x1a9   :  { %462 = vsyncpa [#allocation3 + $0x1], 1 }
 0x1aa   :  { %463 = vsyncpa [#allocation6], 1 }
 0x1ab   :  { %464 = vsyncpa [#allocation4], 1 }
 0x1ac   :  { %466 = vsyncpa [#allocation4 + $0x1], 1 }

</bundles_post_ra>
